<compile_context>
chip_gen: v5e
topology: v5e:2x2
jax: 0.10.0
libtpu: 0.0.40
codegen_flags: <defaults>
</compile_context>

<pallas_src>
import functools

import jax
import jax.numpy as jnp
from jax.experimental import pallas as pl
from jax.experimental.pallas import tpu as pltpu


def d_matrix(n):
    d = jnp.zeros((n - 1, n), dtype=jnp.float32)
    d = d.at[:, 1:].add(jnp.eye(n - 1, dtype=jnp.float32))
    d = d.at[:, :-1].add(-jnp.eye(n - 1, dtype=jnp.float32))
    return d


def hp_filter_matrix(T, lamb):
    """Precompute inv(I + lamb * (D2@D1)^T (D2@D1))^T once per (T, lamb)."""
    D1 = d_matrix(T)
    D2 = d_matrix(T - 1)
    D = D2 @ D1
    A = jnp.eye(T, dtype=jnp.float32) + lamb * (D.T @ D)
    # TODO(synk): dense matrix inverse has no clean Pallas equivalent; done in
    # plain JAX.  (A is SPD & pentadiagonal; a banded Cholesky solve would be
    # numerically nicer, but we match the PyTorch torch.inverse spec.)
    return jnp.linalg.inv(A).T


def _round_up(a, b):
    return (a + b - 1) // b * b


def _cdiv(a, b):
    return -(-a // b)


def _split_dim(total, tile_pref, granularity):
    """Split `total` into equal tiles (multiples of `granularity`), each at
    most ~tile_pref, minimizing padding.  Returns (tile, n_tiles)."""
    n = max(1, _cdiv(total, tile_pref))
    tile = _round_up(_cdiv(total, n), granularity)
    return tile, _cdiv(total, tile)


def _vmem_capacity_bytes():
    try:
        cap = int(pltpu.get_tpu_info().vmem_capacity_bytes)
        if cap > 0:
            return cap
    except Exception:
        pass
    return 64 * 1024 * 1024  # conservative fallback (v7x-sized VMEM)


def _default_compute_dtype():
    # v5e's MXU has no native f32 operand path -> default bf16 operands there
    # (accumulation and the residual stay f32 inside the kernel).
    try:
        kind = jax.devices()[0].device_kind.lower()
    except Exception:
        return jnp.dtype(jnp.float32)
    if ("v5 lite" in kind) or ("v5e" in kind) or ("v5litepod" in kind):
        return jnp.dtype(jnp.bfloat16)
    return jnp.dtype(jnp.float32)


def _hp_resident_kernel(x_ref, w_ref, g_ref, res_ref):
    # Whole (Tp, Tp) filter matrix is VMEM-resident (constant block index ->
    # fetched from HBM once).  One MXU dot + residual per (tm, Tp) x tile.
    # x arrives in f32 and is cast to the MXU operand dtype only for the dot,
    # so res = x - g is exact in f32.
    x = x_ref[...]
    g = jnp.dot(x.astype(w_ref.dtype), w_ref[...],
                preferred_element_type=jnp.float32)
    g_ref[...] = g.astype(g_ref.dtype)
    res_ref[...] = (x - g).astype(res_ref.dtype)


def _hp_streamed_kernel(xk_ref, w_ref, xn_ref, g_ref, res_ref, acc_ref):
    # Fallback for very large T: grid = (M tiles, N tiles, K tiles), K last.
    # f32 accumulator zero-init at k == 0, outputs written once at k == last.
    k = pl.program_id(2)

    @pl.when(k == 0)
    def _():
        acc_ref[...] = jnp.zeros_like(acc_ref)

    acc_ref[...] += jnp.dot(xk_ref[...], w_ref[...],
                            preferred_element_type=jnp.float32)

    @pl.when(k == pl.num_programs(2) - 1)
    def _():
        g = acc_ref[...]
        g_ref[...] = g.astype(g_ref.dtype)
        res_ref[...] = (xn_ref[...] - g).astype(res_ref.dtype)


@functools.partial(
    jax.jit,
    static_argnames=("lamb", "compute_dtype", "vmem_capacity_bytes", "path",
                     "tm_pref", "tt_pref"))
def _hp_filter_impl(x, minv_t, *, lamb, compute_dtype, vmem_capacity_bytes,
                    path=None, tm_pref=256, tt_pref=512):
    compute_dtype = jnp.dtype(compute_dtype)
    B, C, T = x.shape
    if minv_t is None:
        minv_t = hp_filter_matrix(T, lamb)
    if x.dtype != jnp.float32:
        x = x.astype(jnp.float32)

    M = B * C
    op_bytes = compute_dtype.itemsize
    f32 = 4

    cap = int(vmem_capacity_bytes)
    budget = int(cap * 0.6)  # what our own buffers may take
    vmem_limit = max(int(min(cap * 0.85, cap - (2 << 20))), 8 << 20)

    x2 = x.reshape(M, T)  # (B, C, T) -> (B*C, T): metadata-only reshape

    # ------------------------- resident-W fast path -------------------------
    Tp_res = _round_up(T, 128)
    # Constant block index -> W is DMA'd once, but the pipeline still allocates
    # two buffers for it, hence the factor 2 in the footprint estimate.
    w_res_bytes = 2 * Tp_res * Tp_res * op_bytes

    def _resident_cfg():
        extra = budget - w_res_bytes
        if extra <= 0:
            return None
        tm_cap = (extra // (6 * Tp_res * f32)) // 8 * 8
        if tm_cap < 8:
            return None
        n_m = max(1, _cdiv(M, tm_pref))
        if n_m == 1 and M >= 16:
            n_m = 2  # >= 2 parallel m-tiles keeps both v7x TensorCores busy
        tm = min(_round_up(_cdiv(M, n_m), 8), tm_cap)
        return tm, _cdiv(M, tm)

    cfg = None if path == "streamed" else _resident_cfg()

    if cfg is not None:
        tm, n_m = cfg
        Mp, Tp = n_m * tm, Tp_res
        x_p = x2 if (Mp == M and Tp == T) else jnp.pad(
            x2, ((0, Mp - M), (0, Tp - T)))
        w_p = minv_t if Tp == T else jnp.pad(
            minv_t, ((0, Tp - T), (0, Tp - T)))
        w_p = w_p.astype(compute_dtype)

        cost = pl.CostEstimate(
            flops=int(2 * Mp * Tp * Tp), transcendentals=0,
            bytes_accessed=int(3 * Mp * Tp * f32 + Tp * Tp * op_bytes))

        g_p, r_p = pl.pallas_call(
            _hp_resident_kernel,
            out_shape=(jax.ShapeDtypeStruct((Mp, Tp), jnp.float32),
                       jax.ShapeDtypeStruct((Mp, Tp), jnp.float32)),
            grid_spec=pltpu.PrefetchScalarGridSpec(
                num_scalar_prefetch=0,
                grid=(n_m,),
                in_specs=[
                    pl.BlockSpec((tm, Tp), lambda m: (m, 0)),   # x (f32)
                    pl.BlockSpec((Tp, Tp), lambda m: (0, 0)),   # W, VMEM-resident
                ],
                out_specs=(pl.BlockSpec((tm, Tp), lambda m: (m, 0)),
                           pl.BlockSpec((tm, Tp), lambda m: (m, 0))),
            ),
            compiler_params=pltpu.CompilerParams(
                dimension_semantics=("parallel",),
                vmem_limit_bytes=vmem_limit),
            cost_estimate=cost,
        )(x_p, w_p)
    else:
        # ---------------------- streamed (tiled-K) path ----------------------
        tt, n_t = _split_dim(T, tt_pref, 128)
        tm, n_m = _split_dim(M, tm_pref, 8)

        def _step_bytes(tm_, tt_):
            return (2 * tm_ * tt_ * op_bytes      # x (matmul view), 2-buffered
                    + 2 * tt_ * tt_ * op_bytes    # W tile, 2-buffered
                    + 2 * tm_ * tt_ * f32         # x (f32, residual view)
                    + 4 * tm_ * tt_ * f32         # g + res output blocks
                    + tm_ * tt_ * f32)            # accumulator scratch

        while _step_bytes(tm, tt) > budget and tt > 128:
            tt, n_t = _split_dim(T, tt // 2, 128)
        while _step_bytes(tm, tt) > budget and tm > 8:
            tm, n_m = _split_dim(M, tm // 2, 8)

        Mp, Tp = n_m * tm, n_t * tt
        x_p = x2 if (Mp == M and Tp == T) else jnp.pad(
            x2, ((0, Mp - M), (0, Tp - T)))
        w_p = minv_t if Tp == T else jnp.pad(
            minv_t, ((0, Tp - T), (0, Tp - T)))
        w_p = w_p.astype(compute_dtype)
        # f32 path: matmul view and residual view are the SAME array (no
        # duplicate HBM copy); bf16 path: one narrow copy for the MXU stream.
        xk_in = x_p if compute_dtype == jnp.float32 else x_p.astype(compute_dtype)

        cost = pl.CostEstimate(
            flops=int(2 * Mp * Tp * Tp), transcendentals=0,
            bytes_accessed=int(n_t * Mp * Tp * op_bytes     # xk re-streamed / n
                               + n_m * Tp * Tp * op_bytes   # W re-streamed / m
                               + 3 * Mp * Tp * f32))        # xn + g + res

        g_p, r_p = pl.pallas_call(
            _hp_streamed_kernel,
            out_shape=(jax.ShapeDtypeStruct((Mp, Tp), jnp.float32),
                       jax.ShapeDtypeStruct((Mp, Tp), jnp.float32)),
            grid_spec=pltpu.PrefetchScalarGridSpec(
                num_scalar_prefetch=0,
                grid=(n_m, n_t, n_t),
                in_specs=[
                    pl.BlockSpec((tm, tt), lambda m, n, k: (m, k)),  # x, matmul
                    pl.BlockSpec((tt, tt), lambda m, n, k: (k, n)),  # W
                    pl.BlockSpec((tm, tt), lambda m, n, k: (m, n)),  # x f32, resid
                ],
                out_specs=(pl.BlockSpec((tm, tt), lambda m, n, k: (m, n)),
                           pl.BlockSpec((tm, tt), lambda m, n, k: (m, n))),
                scratch_shapes=[pltpu.VMEM((tm, tt), jnp.float32)],
            ),
            compiler_params=pltpu.CompilerParams(
                dimension_semantics=("parallel", "parallel", "arbitrary"),
                vmem_limit_bytes=vmem_limit),
            cost_estimate=cost,
        )(xk_in, w_p, x_p)

    if Mp != M or Tp != T:
        g_p = g_p[:M, :T]
        r_p = r_p[:M, :T]
    g = g_p.reshape(B, C, T)
    res = r_p.reshape(B, C, T)
    return res, g


def hp_filter(x, lamb, minv_t=None, compute_dtype=None, path=None):
    """x: (B, C, T) float32. Returns (res, g), each (B, C, T)."""
    if compute_dtype is None:
        compute_dtype = _default_compute_dtype()
    return _hp_filter_impl(
        x, minv_t,
        lamb=float(lamb),
        compute_dtype=jnp.dtype(compute_dtype),
        vmem_capacity_bytes=_vmem_capacity_bytes(),
        path=path)


def _hp_filter_ref(x, lamb):
    # Pure-JAX reference mirroring the PyTorch code (with permutes).
    xp = jnp.transpose(x, (0, 2, 1))                          # (B, T, C)
    N = xp.shape[1]
    D = d_matrix(N - 1) @ d_matrix(N)
    A = jnp.eye(N, dtype=jnp.float32) + lamb * (D.T @ D)
    g = jnp.matmul(jnp.linalg.inv(A), xp)                     # (B, T, C)
    res = xp - g
    return jnp.transpose(res, (0, 2, 1)), jnp.transpose(g, (0, 2, 1))


if __name__ == "__main__":
    key = jax.random.PRNGKey(0)
    B, C, T = 2, 4, 16
    lamb = 10.0
    x = jax.random.normal(key, (B, C, T), dtype=jnp.float32)

    # Hoisted filter-matrix precompute, reused across calls.
    minv_t = hp_filter_matrix(T, lamb)
    res_ref, g_ref = _hp_filter_ref(x, lamb)

    # Resident-W fast path, f32 MXU operands (reference-precision path).
    res, g = hp_filter(x, lamb, minv_t, compute_dtype=jnp.float32)
    jax.block_until_ready((res, g))
    assert jnp.allclose(res, res_ref, atol=1e-4, rtol=1e-4)
    assert jnp.allclose(g, g_ref, atol=1e-4, rtol=1e-4)

    # Streamed (tiled-K) fallback path, forced, same tolerance.
    res_s, g_s = hp_filter(x, lamb, minv_t, compute_dtype=jnp.float32,
                           path="streamed")
    jax.block_until_ready((res_s, g_s))
    assert jnp.allclose(res_s, res_ref, atol=1e-4, rtol=1e-4)
    assert jnp.allclose(g_s, g_ref, atol=1e-4, rtol=1e-4)

    # bf16 MXU operands with f32 accumulation (v5e default / fast MXU path).
    res_bf, g_bf = hp_filter(x, lamb, minv_t, compute_dtype=jnp.bfloat16)
    jax.block_until_ready((res_bf, g_bf))
    assert jnp.allclose(g_bf, g_ref, atol=1e-1, rtol=1e-1)
    assert jnp.allclose(res_bf, res_ref, atol=1e-1, rtol=1e-1)

    print("KERNEL_OK")
</pallas_src>

<mosaic_0001>
module attributes {stable_mosaic.version = 11 : i64} {
  func.func @_hp_resident_kernel(%arg0: i32, %arg1: memref<8x128xf32, #tpu.memory_space<vmem>>, %arg2: memref<128x128xf32, #tpu.memory_space<vmem>>, %arg3: memref<8x128xf32, #tpu.memory_space<vmem>>, %arg4: memref<8x128xf32, #tpu.memory_space<vmem>>) attributes {dimension_semantics = [#tpu.dimension_semantics<parallel>], iteration_bounds = array<i64: 1>, scalar_prefetch = 0 : i64, scratch_operands = 0 : i64, tpu.core_type = #tpu.core_type<tc>, window_params = [{transform_indices = @transform_0, window_bounds = array<i64: 8, 128>}, {pipeline_mode = #tpu.pipeline_mode<synchronous>, transform_indices = @transform_1, window_bounds = array<i64: 128, 128>}, {transform_indices = @transform_2, window_bounds = array<i64: 8, 128>}, {transform_indices = @transform_3, window_bounds = array<i64: 8, 128>}]} {
    %c0 = arith.constant 0 : index
    %c0_0 = arith.constant 0 : index
    %0 = vector.load %arg1[%c0, %c0_0] : memref<8x128xf32, #tpu.memory_space<vmem>>, vector<8x128xf32>
    %c0_1 = arith.constant 0 : index
    %c0_2 = arith.constant 0 : index
    %1 = vector.load %arg2[%c0_1, %c0_2] : memref<128x128xf32, #tpu.memory_space<vmem>>, vector<128x128xf32>
    %cst = arith.constant dense<0.000000e+00> : vector<8x128xf32>
    %2 = tpu.matmul %0, %1, %cst {dimension_numbers = #tpu.dot_dimension_numbers<[1], [0], [0], [1], [0, 0, 1, 1], [], []>} : vector<8x128xf32>, vector<128x128xf32>, vector<8x128xf32> -> vector<8x128xf32>
    %c0_3 = arith.constant 0 : index
    %c0_4 = arith.constant 0 : index
    %3 = vector.load %arg3[%c0_3, %c0_4] : memref<8x128xf32, #tpu.memory_space<vmem>>, vector<8x128xf32>
    tpu.vector_store %arg3[%c0_3, %c0_4], %2 {strides = array<i32>} : memref<8x128xf32, #tpu.memory_space<vmem>>, vector<8x128xf32>,
    %4 = arith.subf %0, %2 : vector<8x128xf32>
    %c0_5 = arith.constant 0 : index
    %c0_6 = arith.constant 0 : index
    %5 = vector.load %arg4[%c0_5, %c0_6] : memref<8x128xf32, #tpu.memory_space<vmem>>, vector<8x128xf32>
    tpu.vector_store %arg4[%c0_5, %c0_6], %4 {strides = array<i32>} : memref<8x128xf32, #tpu.memory_space<vmem>>, vector<8x128xf32>,
    return
  }
  func.func @transform_0(%arg0: i32) -> (i32, i32) {
    %c0_i32 = arith.constant 0 : i32
    %c0_i32_0 = arith.constant 0 : i32
    return %arg0, %c0_i32 : i32, i32
  }
  func.func @transform_1(%arg0: i32) -> (i32, i32) {
    %c0_i32 = arith.constant 0 : i32
    %c0_i32_0 = arith.constant 0 : i32
    %c0_i32_1 = arith.constant 0 : i32
    return %c0_i32, %c0_i32_0 : i32, i32
  }
  func.func @transform_2(%arg0: i32) -> (i32, i32) {
    %c0_i32 = arith.constant 0 : i32
    %c0_i32_0 = arith.constant 0 : i32
    return %arg0, %c0_i32 : i32, i32
  }
  func.func @transform_3(%arg0: i32) -> (i32, i32) {
    %c0_i32 = arith.constant 0 : i32
    %c0_i32_0 = arith.constant 0 : i32
    return %arg0, %c0_i32 : i32, i32
  }
}

</mosaic_0001>

<bundles_post_ra>
// kernel: _hp_filter_impl.1
= control target key start
LH: loop header
LB: loop body
LE: loop exit
PB: predicated region body
PF: predicated region fallthrough
CT: control target
= control target key end

     0   :  { %9 = vsyncpa [#allocation3], 0  ;;  %s220_s0 = inlined_call_operand.vmem [shape: f32[8,128], index: 0, kind: input, shape index: {}]   ;;  %s221_s1 = inlined_call_operand.vmem [shape: f32[128,128], index: 1, kind: input, shape index: {}]   ;;  %s222_s2 = inlined_call_operand.hbm [shape: f32[8,128], index: 2, kind: output, shape index: {0}]   ;;  %s223_s3 = inlined_call_operand.hbm [shape: f32[8,128], index: 3, kind: output, shape index: {1}]  }
   0x1   :  { %v31_v0 = vld [vmem:[%s221_s1 + $0x78] sm:$0xff]  ;;  %v30_v1 = vld [vmem:[%s221_s1 + $0x70] sm:$0xff]  ;;  %v29_v2 = vld [vmem:[%s221_s1 + $0x68] sm:$0xff] }
   0x2   :  { %32 = vmatpush.msra.mxu0 %v31_v0  ;;  %v28_v3 = vld [vmem:[%s221_s1 + $0x60] sm:$0xff] }
   0x4   :  { %33 = vmatpush.msra.mxu0 %v30_v1 }
   0x6   :  { %34 = vmatpush.msra.mxu0 %v29_v2 }
   0x7   :  { %10 = vsyncpa [#allocation5], 0  ;;  %v27_v4 = vld [vmem:[%s221_s1 + $0x58] sm:$0xff]  ;;  %v26_v5 = vld [vmem:[%s221_s1 + $0x50] sm:$0xff]  ;;  %s141_s19 = smov [#allocation2]   ;;  %s62_s23 = sshll.u32 %s222_s2, 4  ;;  %s63_s23 = int_to_ptr.hbm [resolvable:$true] %s62_s23 }
   0x8   :  { %35 = vmatpush.msra.mxu0 %v28_v3  ;;  %v25_v6 = vld [vmem:[%s221_s1 + $0x48] sm:$0xff]  ;;  %v24_v7 = vld [vmem:[%s221_s1 + $0x40] sm:$0xff]  ;;  %v23_v8 = vld [vmem:[%s221_s1 + $0x38] sm:$0xff]  ;;  %s60_s20 = sshll.u32 %s141_s19, 4  ;;  %s142_s24 = smov [#allocation4]   ;;  %s61_s20 = int_to_ptr.vmem [resolvable:$true] %s60_s20 }
   0x9   :  { %v22_v9 = vld [vmem:[%s221_s1 + $0x30] sm:$0xff]  ;;  %v21_v10 = vld [vmem:[%s221_s1 + $0x28] sm:$0xff]  ;;  %v20_v11 = vld [vmem:[%s221_s1 + $0x20] sm:$0xff]  ;;  %s71_s25 = sshll.u32 %s142_s24, 4  ;;  %s73_s28 = sshll.u32 %s223_s3, 4  ;;  %s72_s25 = int_to_ptr.vmem [resolvable:$true] %s71_s25  ;;  %s74_s28 = int_to_ptr.hbm [resolvable:$true] %s73_s28 }
   0xa   :  { %36 = vmatpush.msra.mxu0 %v27_v4  ;;  %v19_v12 = vld [vmem:[%s221_s1 + $0x18] sm:$0xff]  ;;  %v18_v13 = vld [vmem:[%s221_s1 + $0x10] sm:$0xff]  ;;  %v17_v14 = vld [vmem:[%s221_s1 + $0x8] sm:$0xff] }
   0xb   :  { %v16_v15 = vld [vmem:[%s221_s1] sm:$0xff] }
   0xc   :  { %37 = vmatpush.msra.mxu0 %v26_v5  ;;  %v15_v16 = vld [vmem:[%s220_s0] sm:$0xff] }
   0xe   :  { %38 = vmatpush.msra.mxu0 %v25_v6 }
  0x10   :  { %39 = vmatpush.msra.mxu0 %v24_v7 }
  0x12   :  { %40 = vmatpush.msra.mxu0 %v23_v8 }
  0x14   :  { %41 = vmatpush.msra.mxu0 %v22_v9 }
  0x16   :  { %42 = vmatpush.msra.mxu0 %v21_v10 }
  0x18   :  { %43 = vmatpush.msra.mxu0 %v20_v11 }
  0x1a   :  { %44 = vmatpush.msra.mxu0 %v19_v12 }
  0x1c   :  { %45 = vmatpush.msra.mxu0 %v18_v13 }
  0x1e   :  { %46 = vmatpush.msra.mxu0 %v17_v14 }
  0x20   :  { %47 = vmatpush.msra.mxu0 %v16_v15 }
  0x21   :  { %48 = vmatmul.f32.vlgmr.msra.gmra.mxu0 %v15_v16 }
  0x9e   :  { %v49_v17 = vpop.f32.mrf.mxu0 }
  0x9f   :  { %52 = vst [vmem:[#allocation2] sm:$0xff] %v49_v17  ;;  %v53_v18 = vsub.f32 %v15_v16, %v49_v17 }
  0xa0   :  { %65 = dma.vmem_to_hbm [thread:$0]  %s61_s20, 128, %s63_s23, [#allocation3]  }
  0xa1   :  { %54 = vst [vmem:[#allocation4] sm:$0xff] %v53_v18 }
  0xa2   :  { %76 = dma.vmem_to_hbm [thread:$0]  %s72_s25, 128, %s74_s28, [#allocation5]  }
  0xa3   :  { %137 = dma.done.wait [#allocation3], 128  }
  0xa4   :  { %138 = vsyncadd [#allocation3], 4294967168 }
  0xa5   :  { %139 = dma.done.wait [#allocation5], 128  }
  0xa6   :  { %140 = vsyncadd [#allocation5], 4294967168 }
  0xa7   :  { %85 = vsyncpa [#allocation3], 1 }
  0xa8   :  { %86 = vsyncpa [#allocation5], 1 }

</bundles_post_ra>
